<compile_context>
chip_gen: v5e
topology: v5e:2x2
jax: 0.10.0
libtpu: 0.0.40
codegen_flags: <defaults>
</compile_context>

<pallas_src>
import functools

import jax
import jax.numpy as jnp
from jax.experimental import pallas as pl
from jax.experimental.pallas import tpu as pltpu


def _round_up(x, m):
    return ((x + m - 1) // m) * m


def _vmem_limit_bytes():
    """Chip-adaptive scoped-VMEM budget (96 MiB on 128-MiB chips, ~48 MiB on v7x)."""
    try:
        cap = int(pltpu.get_tpu_info().vmem_capacity_bytes)
    except Exception:
        cap = 64 * 1024 * 1024
    return int(min(max(cap - 16 * 1024 * 1024, 32 * 1024 * 1024), 96 * 1024 * 1024))


def _pick_row_tile(m, target, align=8):
    """Largest row tile <= target that divides m and is a multiple of `align` (or m)."""
    if m <= target:
        return m
    t = (target // align) * align
    while t >= align:
        if m % t == 0:
            return t
        t -= align
    if align > 8:
        return _pick_row_tile(m, target, align=8)
    # TODO(synk): pad ragged N up to a multiple of 8 (and mask) instead of full-size fallback.
    return m


def _proj_row_tile(m, hp):
    # Big tiles amortise the ~0.35us/step grid overhead; cap by a ~4 MiB input-tile budget.
    target = max(256, min(4096, (4 * 1024 * 1024) // max(4 * hp, 1)))
    return _pick_row_tile(m, target=target, align=8)


def _contrast_row_tile(n):
    # Keep each [tm, n] f32 similarity/mask temporary around ~4 MiB (v7x-safe), cap tm=256.
    budget_rows = max(32, (4 * 1024 * 1024) // max(4 * n, 1))
    target = int(min(256, budget_rows))
    return _pick_row_tile(n, target=target, align=32)   # 32 = int8-native sublane tile


# ----------------------------------------------------------------------------
# Kernel 1: fused projection head for all 3 views  (Linear -> ELU -> Linear)
#           + row L2 normalisation folded into the epilogue.
# ----------------------------------------------------------------------------
def _proj_norm_kernel(x_ref, w1_ref, b1_ref, w2_ref, b2_ref, o_ref):
    x = x_ref[...]
    h = jnp.dot(x, w1_ref[...], preferred_element_type=jnp.float32) + b1_ref[...]
    # ELU(alpha=1): clamp the (always-evaluated) negative branch so exp never overflows.
    h = jnp.where(h > 0.0, h, jnp.exp(jnp.minimum(h, 0.0)) - 1.0)
    y = jnp.dot(h, w2_ref[...], preferred_element_type=jnp.float32) + b2_ref[...]
    inv_norm = jax.lax.rsqrt(jnp.sum(y * y, axis=-1, keepdims=True))  # EUP rsqrt
    o_ref[...] = y * inv_norm


def proj_normalize(z_all, w1, b1, w2, b2):
    m, hp = z_all.shape
    tm = _proj_row_tile(m, hp)
    grid = (m // tm,)
    return pl.pallas_call(
        _proj_norm_kernel,
        out_shape=jax.ShapeDtypeStruct((m, hp), jnp.float32),
        grid=grid,
        in_specs=[
            pl.BlockSpec((tm, hp), lambda i: (i, 0)),
            pl.BlockSpec((hp, hp), lambda i: (0, 0)),   # W1 resident (constant index_map)
            pl.BlockSpec((1, hp), lambda i: (0, 0)),
            pl.BlockSpec((hp, hp), lambda i: (0, 0)),   # W2 resident
            pl.BlockSpec((1, hp), lambda i: (0, 0)),
        ],
        out_specs=pl.BlockSpec((tm, hp), lambda i: (i, 0)),
        compiler_params=pltpu.CompilerParams(
            dimension_semantics=("parallel",),
            vmem_limit_bytes=_vmem_limit_bytes(),
        ),
    )(z_all, w1, b1.reshape(1, hp), w2, b2.reshape(1, hp))


# ----------------------------------------------------------------------------
# Kernel 2: fused contrast loss, both pairs (ge,mp) / (ge,sc), both directions.
#   Every row tile is independent: forward direction uses rows of z_ge, the
#   "transposed" direction uses rows of z_mp / z_sc against z_ge columns -- both
#   masked by the SAME int8 pos row tile (so pos is streamed exactly once).
# ----------------------------------------------------------------------------
def _contrast_kernel(zge_ref, zmp_ref, zsc_ref, pos_ref, out_ref, *, inv_tau, block_rows):
    i = pl.program_id(0)
    r0 = i * block_rows
    if block_rows % 8 == 0:
        r0 = pl.multiple_of(r0, 8)
    eps = 1e-8

    posf = pos_ref[...].astype(jnp.float32)                 # int8 -> f32 cast in-kernel

    # 1/tau folded into the [tm, Hp] row tiles only (never the [tm, N] similarity tiles).
    zge_rows = zge_ref[pl.ds(r0, block_rows), :] * inv_tau
    zmp_rows = zmp_ref[pl.ds(r0, block_rows), :] * inv_tau
    zsc_rows = zsc_ref[pl.ds(r0, block_rows), :] * inv_tau

    dn = (((1,), (1,)), ((), ()))   # contract hidden dims: A @ B.T without an XLU transpose

    def _direction(rows, cols):
        s = jnp.exp(jax.lax.dot_general(rows, cols, dn,
                                        preferred_element_type=jnp.float32))
        num = jnp.sum(s * posf, axis=1, keepdims=True)
        den = jnp.sum(s, axis=1, keepdims=True) + eps
        return jnp.sum(jnp.log(num) - jnp.log(den))

    # Each [tm, N] similarity tile is consumed fully before the next one is built,
    # so only one such temporary is live at a time (plus the shared mask tile).
    fwd1 = _direction(zge_rows, zmp_ref[...])   # rows of S(ge,mp)
    bwd1 = _direction(zmp_rows, zge_ref[...])   # rows of S(ge,mp).T
    fwd2 = _direction(zge_rows, zsc_ref[...])   # rows of S(ge,sc)
    bwd2 = _direction(zsc_rows, zge_ref[...])   # rows of S(ge,sc).T

    # Per-tile partial sums in an aligned (8,128) block (rows 0..3 hold the 4 partials).
    rid = jax.lax.broadcasted_iota(jnp.int32, (8, 128), 0)
    blk = jnp.where(rid == 0, fwd1, 0.0)
    blk = jnp.where(rid == 1, bwd1, blk)
    blk = jnp.where(rid == 2, fwd2, blk)
    blk = jnp.where(rid == 3, bwd2, blk)
    out_ref[0, :, :] = blk


def pair_contrast(zge_h, zmp_h, zsc_h, pos_i8, tau, lam, block_rows=None):
    n, hp = zge_h.shape
    tm = block_rows if block_rows is not None else _contrast_row_tile(n)
    assert n % tm == 0, f"row tile {tm} must divide N={n}"
    nt = n // tm
    # TODO(synk): for N large enough that the three resident [N, Hp] views overflow VMEM,
    # additionally tile the column dimension (2-D grid) instead of keeping z resident.
    kernel = functools.partial(_contrast_kernel, inv_tau=1.0 / float(tau), block_rows=tm)
    partials = pl.pallas_call(
        kernel,
        out_shape=jax.ShapeDtypeStruct((nt, 8, 128), jnp.float32),
        grid=(nt,),
        in_specs=[
            pl.BlockSpec((n, hp), lambda i: (0, 0)),   # z_ge resident
            pl.BlockSpec((n, hp), lambda i: (0, 0)),   # z_mp resident
            pl.BlockSpec((n, hp), lambda i: (0, 0)),   # z_sc resident
            pl.BlockSpec((tm, n), lambda i: (i, 0)),   # int8 pos row tiles (streamed once)
        ],
        out_specs=pl.BlockSpec((1, 8, 128), lambda i: (i, 0, 0)),
        compiler_params=pltpu.CompilerParams(
            dimension_semantics=("parallel",),         # tiles independent -> both TCs on v7x
            vmem_limit_bytes=_vmem_limit_bytes(),
        ),
    )(zge_h, zmp_h, zsc_h, pos_i8)

    # Tiny finalize in XLA: sum per-tile partials and apply the lam weighting.
    sums = jnp.sum(partials[:, :4, 0], axis=0)         # [fwd1, bwd1, fwd2, bwd2]
    inv_n = 1.0 / float(n)
    return -(lam * (sums[0] + sums[2]) + (1.0 - lam) * (sums[1] + sums[3])) * inv_n


# ----------------------------------------------------------------------------
# Module wrapper (parameter setup + glue in plain JAX)
# ----------------------------------------------------------------------------
def init_contrast_params(key, hidden_dim):
    """Deterministic init matching nn.Linear + xavier_normal_(gain=1.414)."""
    k1, k2, k3, k4 = jax.random.split(key, 4)
    gain = 1.414
    std = gain * (2.0 / (hidden_dim + hidden_dim)) ** 0.5
    bound = 1.0 / (hidden_dim ** 0.5)
    # PyTorch weight is [out, in]; we store the transposed [in, out] form.
    w1 = (jax.random.normal(k1, (hidden_dim, hidden_dim), jnp.float32) * std).T
    b1 = jax.random.uniform(k2, (hidden_dim,), jnp.float32, -bound, bound)
    w2 = (jax.random.normal(k3, (hidden_dim, hidden_dim), jnp.float32) * std).T
    b2 = jax.random.uniform(k4, (hidden_dim,), jnp.float32, -bound, bound)
    return (w1, b1, w2, b2)


def contrast_forward(params, z_ge, z_mp, z_sc, pos, tau, lam, block_rows=None):
    w1, b1, w2, b2 = params
    n, h = z_ge.shape
    hp = _round_up(h, 128)          # lane-dense hidden; zero-padding is exact (see kernel 1)
    ph = hp - h
    w1p = jnp.pad(w1, ((0, ph), (0, ph)))
    b1p = jnp.pad(b1, (0, ph))
    w2p = jnp.pad(w2, ((0, ph), (0, ph)))
    b2p = jnp.pad(b2, (0, ph))

    # One fused projection call for all three views (weights DMA'd once, taller MXU LHS).
    z_all = jnp.concatenate([z_ge, z_mp, z_sc], axis=0)     # [3N, H]
    if ph:
        z_all = jnp.pad(z_all, ((0, 0), (0, ph)))           # [3N, Hp]
    z_hat = proj_normalize(z_all, w1p, b1p, w2p, b2p)       # L2-normalised rows
    zge_h, zmp_h, zsc_h = z_hat[:n], z_hat[n:2 * n], z_hat[2 * n:]

    # pos is a {0,1} positive-pair mask (HeCo) -> stream as int8 (4x less HBM than f32).
    pos_i8 = pos.astype(jnp.int8)
    return pair_contrast(zge_h, zmp_h, zsc_h, pos_i8, tau, lam, block_rows=block_rows)


# ----------------------------------------------------------------------------
# Pure-JAX reference (mirrors the PyTorch forward exactly), for verification
# ----------------------------------------------------------------------------
def _ref_forward(params, z_ge, z_mp, z_sc, pos, tau, lam):
    w1, b1, w2, b2 = params

    def proj_ref(z):
        h = z @ w1 + b1
        h = jnp.where(h > 0, h, jnp.exp(h) - 1.0)
        return h @ w2 + b2

    def sim(a, b):
        na = jnp.linalg.norm(a, axis=-1, keepdims=True)
        nb = jnp.linalg.norm(b, axis=-1, keepdims=True)
        return jnp.exp((a @ b.T) / (na @ nb.T) / tau)

    zg, zm, zs = proj_ref(z_ge), proj_ref(z_mp), proj_ref(z_sc)

    def pair(s):
        m1 = s / (jnp.sum(s, axis=1, keepdims=True) + 1e-8)
        l_mp = -jnp.mean(jnp.log(jnp.sum(m1 * pos, axis=-1)))
        st = s.T
        m2 = st / (jnp.sum(st, axis=1, keepdims=True) + 1e-8)
        l_sc = -jnp.mean(jnp.log(jnp.sum(m2 * pos, axis=-1)))
        return lam * l_mp + (1.0 - lam) * l_sc

    return pair(sim(zg, zm)) + pair(sim(zg, zs))


if __name__ == "__main__":
    N, H = 64, 32         # samples, hidden
    tau, lam = 0.8, 0.5

    key = jax.random.PRNGKey(0)
    kp, kg, km, ks, kpos = jax.random.split(key, 5)

    params = init_contrast_params(kp, H)
    z_ge = jax.random.normal(kg, (N, H), jnp.float32)
    z_mp = jax.random.normal(km, (N, H), jnp.float32)
    z_sc = jax.random.normal(ks, (N, H), jnp.float32)
    # positive-pair mask: identity plus a few random extra positives
    pos = jnp.maximum(
        jnp.eye(N, dtype=jnp.float32),
        (jax.random.uniform(kpos, (N, N)) < 0.1).astype(jnp.float32),
    )

    # Default (single-tile) path.
    loss = contrast_forward(params, z_ge, z_mp, z_sc, pos, tau, lam)
    loss = jax.block_until_ready(loss)
    # Multi-tile path (exercises the parallel grid + dynamic row slicing).
    loss_tiled = contrast_forward(params, z_ge, z_mp, z_sc, pos, tau, lam, block_rows=32)
    loss_tiled = jax.block_until_ready(loss_tiled)

    ref = _ref_forward(params, z_ge, z_mp, z_sc, pos, tau, lam)
    assert jnp.isfinite(loss), "loss is not finite"
    assert jnp.allclose(loss, ref, rtol=1e-4, atol=1e-4), (loss, ref)
    assert jnp.allclose(loss_tiled, ref, rtol=1e-4, atol=1e-4), (loss_tiled, ref)

    print("KERNEL_OK")
</pallas_src>

<mosaic_0001>
module attributes {stable_mosaic.version = 11 : i64} {
  func.func @_proj_norm_kernel(%arg0: i32, %arg1: memref<192x128xf32, #tpu.memory_space<vmem>>, %arg2: memref<128x128xf32, #tpu.memory_space<vmem>>, %arg3: memref<1x128xf32, #tpu.memory_space<vmem>>, %arg4: memref<128x128xf32, #tpu.memory_space<vmem>>, %arg5: memref<1x128xf32, #tpu.memory_space<vmem>>, %arg6: memref<192x128xf32, #tpu.memory_space<vmem>>) attributes {dimension_semantics = [#tpu.dimension_semantics<parallel>], iteration_bounds = array<i64: 1>, scalar_prefetch = 0 : i64, scratch_operands = 0 : i64, tpu.core_type = #tpu.core_type<tc>, window_params = [{transform_indices = @transform_0, window_bounds = array<i64: 192, 128>}, {pipeline_mode = #tpu.pipeline_mode<synchronous>, transform_indices = @transform_1, window_bounds = array<i64: 128, 128>}, {pipeline_mode = #tpu.pipeline_mode<synchronous>, transform_indices = @transform_2, window_bounds = array<i64: 1, 128>}, {pipeline_mode = #tpu.pipeline_mode<synchronous>, transform_indices = @transform_3, window_bounds = array<i64: 128, 128>}, {pipeline_mode = #tpu.pipeline_mode<synchronous>, transform_indices = @transform_4, window_bounds = array<i64: 1, 128>}, {transform_indices = @transform_5, window_bounds = array<i64: 192, 128>}]} {
    %c0 = arith.constant 0 : index
    %c0_0 = arith.constant 0 : index
    %0 = vector.load %arg1[%c0, %c0_0] : memref<192x128xf32, #tpu.memory_space<vmem>>, vector<192x128xf32>
    %c0_1 = arith.constant 0 : index
    %c0_2 = arith.constant 0 : index
    %1 = vector.load %arg2[%c0_1, %c0_2] : memref<128x128xf32, #tpu.memory_space<vmem>>, vector<128x128xf32>
    %cst = arith.constant dense<0.000000e+00> : vector<192x128xf32>
    %2 = tpu.matmul %0, %1, %cst {dimension_numbers = #tpu.dot_dimension_numbers<[1], [0], [0], [1], [0, 0, 1, 1], [], []>} : vector<192x128xf32>, vector<128x128xf32>, vector<192x128xf32> -> vector<192x128xf32>
    %c0_3 = arith.constant 0 : index
    %c0_4 = arith.constant 0 : index
    %3 = vector.load %arg3[%c0_3, %c0_4] : memref<1x128xf32, #tpu.memory_space<vmem>>, vector<1x128xf32>
    %4 = vector.broadcast %3 : vector<1x128xf32> to vector<192x128xf32>
    %5 = arith.addf %2, %4 : vector<192x128xf32>
    %cst_5 = arith.constant 0.000000e+00 : f32
    %6 = vector.broadcast %cst_5 : f32 to vector<192x128xf32>
    %7 = arith.cmpf ogt, %5, %6 : vector<192x128xf32>
    %cst_6 = arith.constant 0.000000e+00 : f32
    %8 = vector.broadcast %cst_6 : f32 to vector<192x128xf32>
    %9 = arith.minimumf %5, %8 : vector<192x128xf32>
    %10 = math.exp %9 : vector<192x128xf32>
    %cst_7 = arith.constant 1.000000e+00 : f32
    %11 = vector.broadcast %cst_7 : f32 to vector<192x128xf32>
    %12 = arith.subf %10, %11 : vector<192x128xf32>
    %13 = arith.select %7, %5, %12 : vector<192x128xi1>, vector<192x128xf32>
    %c0_8 = arith.constant 0 : index
    %c0_9 = arith.constant 0 : index
    %14 = vector.load %arg4[%c0_8, %c0_9] : memref<128x128xf32, #tpu.memory_space<vmem>>, vector<128x128xf32>
    %cst_10 = arith.constant dense<0.000000e+00> : vector<192x128xf32>
    %15 = tpu.matmul %13, %14, %cst_10 {dimension_numbers = #tpu.dot_dimension_numbers<[1], [0], [0], [1], [0, 0, 1, 1], [], []>} : vector<192x128xf32>, vector<128x128xf32>, vector<192x128xf32> -> vector<192x128xf32>
    %c0_11 = arith.constant 0 : index
    %c0_12 = arith.constant 0 : index
    %16 = vector.load %arg5[%c0_11, %c0_12] : memref<1x128xf32, #tpu.memory_space<vmem>>, vector<1x128xf32>
    %17 = vector.broadcast %16 : vector<1x128xf32> to vector<192x128xf32>
    %18 = arith.addf %15, %17 : vector<192x128xf32>
    %19 = arith.mulf %18, %18 : vector<192x128xf32>
    %cst_13 = arith.constant dense<0.000000e+00> : vector<192xf32>
    %20 = vector.multi_reduction <add>, %19, %cst_13 [1] : vector<192x128xf32> to vector<192xf32>
    %21 = vector.shape_cast %20 : vector<192xf32> to vector<192x1xf32>
    %22 = math.rsqrt %21 : vector<192x1xf32>
    %23 = vector.broadcast %22 : vector<192x1xf32> to vector<192x128xf32>
    %24 = arith.mulf %18, %23 : vector<192x128xf32>
    %c0_14 = arith.constant 0 : index
    %c0_15 = arith.constant 0 : index
    %25 = vector.load %arg6[%c0_14, %c0_15] : memref<192x128xf32, #tpu.memory_space<vmem>>, vector<192x128xf32>
    tpu.vector_store %arg6[%c0_14, %c0_15], %24 {strides = array<i32>} : memref<192x128xf32, #tpu.memory_space<vmem>>, vector<192x128xf32>,
    return
  }
  func.func @transform_0(%arg0: i32) -> (i32, i32) {
    %c0_i32 = arith.constant 0 : i32
    %c0_i32_0 = arith.constant 0 : i32
    return %arg0, %c0_i32 : i32, i32
  }
  func.func @transform_1(%arg0: i32) -> (i32, i32) {
    %c0_i32 = arith.constant 0 : i32
    %c0_i32_0 = arith.constant 0 : i32
    %c0_i32_1 = arith.constant 0 : i32
    return %c0_i32, %c0_i32_0 : i32, i32
  }
  func.func @transform_2(%arg0: i32) -> (i32, i32) {
    %c0_i32 = arith.constant 0 : i32
    %c0_i32_0 = arith.constant 0 : i32
    %c0_i32_1 = arith.constant 0 : i32
    return %c0_i32, %c0_i32_0 : i32, i32
  }
  func.func @transform_3(%arg0: i32) -> (i32, i32) {
    %c0_i32 = arith.constant 0 : i32
    %c0_i32_0 = arith.constant 0 : i32
    %c0_i32_1 = arith.constant 0 : i32
    return %c0_i32, %c0_i32_0 : i32, i32
  }
  func.func @transform_4(%arg0: i32) -> (i32, i32) {
    %c0_i32 = arith.constant 0 : i32
    %c0_i32_0 = arith.constant 0 : i32
    %c0_i32_1 = arith.constant 0 : i32
    return %c0_i32, %c0_i32_0 : i32, i32
  }
  func.func @transform_5(%arg0: i32) -> (i32, i32) {
    %c0_i32 = arith.constant 0 : i32
    %c0_i32_0 = arith.constant 0 : i32
    return %arg0, %c0_i32 : i32, i32
  }
}

</mosaic_0001>

<bundles_post_ra>
// kernel: tpu_custom_call.1
= control target key start
LH: loop header
LB: loop body
LE: loop exit
PB: predicated region body
PF: predicated region fallthrough
CT: control target
= control target key end

     0   :  { %10 = vsyncpa [#allocation3], 0  ;;  %s1369_s0 = inlined_call_operand.hbm [shape: f32[192,128], index: 0, kind: input, shape index: {}]   ;;  %s1370_s1 = inlined_call_operand.hbm [shape: f32[128,128], index: 1, kind: input, shape index: {}]   ;;  %s1371_s2 = inlined_call_operand.vmem [shape: f32[1,128], index: 2, kind: input, shape index: {}]   ;;  %s1372_s3 = inlined_call_operand.hbm [shape: f32[128,128], index: 3, kind: input, shape index: {}]   ;;  %s1373_s4 = inlined_call_operand.vmem [shape: f32[1,128], index: 4, kind: input, shape index: {}]   ;;  %s1374_s5 = inlined_call_operand.hbm [shape: f32[192,128], index: 5, kind: output, shape index: {}]  }
   0x1   :  { %11 = vsyncpa [#allocation6], 0 }
   0x2   :  { %12 = vsyncpa [#allocation4], 0  ;;  %s30_s20 = sshll.u32 %s1370_s1, 4  ;;  %s1096_s21 = smov [#allocation5]   ;;  %s31_s20 = int_to_ptr.hbm [resolvable:$true] %s30_s20 }
   0x3   :  { %s32_s22 = sshll.u32 %s1096_s21, 4  ;;  %s17_s25 = sshll.u32 %s1369_s0, 4  ;;  %s33_s22 = int_to_ptr.vmem [resolvable:$true] %s32_s22  ;;  %s18_s25 = int_to_ptr.hbm [resolvable:$true] %s17_s25 }
   0x4   :  { %s1097_s26 = smov 128   ;;  %s1098_s27 = smov 8  }
   0x5   :  { %38 = dma.hbm_to_vmem [thread:$0]  %s31_s20, 2048, %s33_s22, [#allocation6], %s1097_s26, %s1097_s26, %s1098_s27  }
   0x6   :  { %s1099_s28 = smov [#allocation2]   ;;  %s45_s1 = sshll.u32 %s1372_s3, 4  ;;  %s46_s1 = int_to_ptr.hbm [resolvable:$true] %s45_s1 }
   0x7   :  { %s19_s29 = sshll.u32 %s1099_s28, 4  ;;  %s1100_s0 = smov [#allocation7]   ;;  %s20_s29 = int_to_ptr.vmem [resolvable:$true] %s19_s29 }
   0x8   :  { %25 = dma.hbm_to_vmem [thread:$0]  %s18_s25, 3072, %s20_s29, [#allocation3], %s1097_s26, %s1097_s26, %s1098_s27  }
   0x9   :  { %s47_s7 = sshll.u32 %s1100_s0, 4  ;;  %s48_s7 = int_to_ptr.vmem [resolvable:$true] %s47_s7 }
   0xa   :  { %53 = dma.hbm_to_vmem [thread:$0]  %s46_s1, 2048, %s48_s7, [#allocation6], %s1097_s26, %s1097_s26, %s1098_s27  }
   0xb   :  { %1090 = dma.done.wait [#allocation3], 3072  }
   0xc   :  { %1091 = vsyncadd [#allocation3], 4294964224 }
   0xd   :  { %1092 = dma.done.wait [#allocation6], 4096  }
   0xe   :  { %1093 = vsyncadd [#allocation6], 4294963200  ;;  %v107_v0 = vld [vmem:[#allocation5 + $0x78] sm:$0xff]  ;;  %v106_v1 = vld [vmem:[#allocation5 + $0x70] sm:$0xff]  ;;  %s820_s13 = sshll.u32 %s1374_s5, 4  ;;  %s821_s13 = int_to_ptr.hbm [resolvable:$true] %s820_s13 }
   0xf   :  { %112 = vmatpush.msra.mxu0 %v107_v0  ;;  %858 = vmatpush.msra.mxu2 %v107_v0  ;;  %v105_v2 = vld [vmem:[#allocation5 + $0x68] sm:$0xff]  ;;  %v104_v3 = vld [vmem:[#allocation5 + $0x60] sm:$0xff]  ;;  %v103_v4 = vld [vmem:[#allocation5 + $0x58] sm:$0xff] }
  0x10   :  { %v102_v5 = vld [vmem:[#allocation5 + $0x50] sm:$0xff]  ;;  %v101_v6 = vld [vmem:[#allocation5 + $0x48] sm:$0xff]  ;;  %v100_v7 = vld [vmem:[#allocation5 + $0x40] sm:$0xff] }
  0x11   :  { %113 = vmatpush.msra.mxu0 %v106_v1  ;;  %859 = vmatpush.msra.mxu2 %v106_v1  ;;  %v99_v8 = vld [vmem:[#allocation5 + $0x38] sm:$0xff]  ;;  %v98_v9 = vld [vmem:[#allocation5 + $0x30] sm:$0xff]  ;;  %v97_v10 = vld [vmem:[#allocation5 + $0x28] sm:$0xff] }
  0x12   :  { %v96_v11 = vld [vmem:[#allocation5 + $0x20] sm:$0xff]  ;;  %v95_v12 = vld [vmem:[#allocation5 + $0x18] sm:$0xff]  ;;  %v94_v13 = vld [vmem:[#allocation5 + $0x10] sm:$0xff] }
  0x13   :  { %114 = vmatpush.msra.mxu0 %v105_v2  ;;  %860 = vmatpush.msra.mxu2 %v105_v2  ;;  %v93_v14 = vld [vmem:[#allocation5 + $0x8] sm:$0xff]  ;;  %v92_v15 = vld [vmem:[#allocation5] sm:$0xff]  ;;  %v70_v20 = vld [vmem:[#allocation2 + $0x10] sm:$0xff] }
  0x14   :  { %v68_v16 = vld [vmem:[#allocation2] sm:$0xff]  ;;  %v69_v18 = vld [vmem:[#allocation2 + $0x8] sm:$0xff]  ;;  %v82_v21 = vld [vmem:[#allocation2 + $0x70] sm:$0xff] }
  0x15   :  { %115 = vmatpush.msra.mxu0 %v104_v3  ;;  %861 = vmatpush.msra.mxu2 %v104_v3  ;;  %v80_v17 = vld [vmem:[#allocation2 + $0x60] sm:$0xff]  ;;  %v81_v19 = vld [vmem:[#allocation2 + $0x68] sm:$0xff]  ;;  %v71_v22 = vld [vmem:[#allocation2 + $0x18] sm:$0xff] }
  0x16   :  { %v83_v23 = vld [vmem:[#allocation2 + $0x78] sm:$0xff]  ;;  %v72_v24 = vld [vmem:[#allocation2 + $0x20] sm:$0xff]  ;;  %v73_v26 = vld [vmem:[#allocation2 + $0x28] sm:$0xff] }
  0x17   :  { %116 = vmatpush.msra.mxu0 %v103_v4  ;;  %862 = vmatpush.msra.mxu2 %v103_v4  ;;  %v84_v25 = vld [vmem:[#allocation2 + $0x80] sm:$0xff]  ;;  %v85_v27 = vld [vmem:[#allocation2 + $0x88] sm:$0xff]  ;;  %v74_v28 = vld [vmem:[#allocation2 + $0x30] sm:$0xff] }
  0x18   :  { %v86_v29 = vld [vmem:[#allocation2 + $0x90] sm:$0xff]  ;;  %v75_v30 = vld [vmem:[#allocation2 + $0x38] sm:$0xff]  ;;  %v358_v34 = vld [vmem:[#allocation7 + $0x68] sm:$0xff] }
  0x19   :  { %117 = vmatpush.msra.mxu0 %v102_v5  ;;  %863 = vmatpush.msra.mxu2 %v102_v5  ;;  %v87_v31 = vld [vmem:[#allocation2 + $0x98] sm:$0xff]  ;;  %v359_v33 = vld [vmem:[#allocation7 + $0x70] sm:$0xff]  ;;  %v357_v35 = vld [vmem:[#allocation7 + $0x60] sm:$0xff] }
  0x1a   :  { %v360_v32 = vld [vmem:[#allocation7 + $0x78] sm:$0xff]  ;;  %v76_v36 = vld [vmem:[#allocation2 + $0x40] sm:$0xff]  ;;  %v355_v39 = vld [vmem:[#allocation7 + $0x50] sm:$0xff] }
  0x1b   :  { %118 = vmatpush.msra.mxu0 %v101_v6  ;;  %864 = vmatpush.msra.mxu2 %v101_v6  ;;  %v88_v37 = vld [vmem:[#allocation2 + $0xa0] sm:$0xff]  ;;  %v356_v38 = vld [vmem:[#allocation7 + $0x58] sm:$0xff]  ;;  %v354_v40 = vld [vmem:[#allocation7 + $0x48] sm:$0xff] }
  0x1c   :  { %365 = vmatpush.msra.mxu1 %v360_v32  ;;  %874 = vmatpush.msra.mxu3 %v360_v32  ;;  %v77_v41 = vld [vmem:[#allocation2 + $0x48] sm:$0xff]  ;;  %v78_v43 = vld [vmem:[#allocation2 + $0x50] sm:$0xff]  ;;  %v79_v45 = vld [vmem:[#allocation2 + $0x58] sm:$0xff] }
  0x1d   :  { %119 = vmatpush.msra.mxu0 %v100_v7  ;;  %865 = vmatpush.msra.mxu2 %v100_v7  ;;  %v89_v42 = vld [vmem:[#allocation2 + $0xa8] sm:$0xff]  ;;  %v90_v44 = vld [vmem:[#allocation2 + $0xb0] sm:$0xff]  ;;  %v91_v46 = vld [vmem:[#allocation2 + $0xb8] sm:$0xff] }
  0x1e   :  { %366 = vmatpush.msra.mxu1 %v359_v33  ;;  %875 = vmatpush.msra.mxu3 %v359_v33  ;;  %v353_v47 = vld [vmem:[#allocation7 + $0x40] sm:$0xff]  ;;  %v352_v48 = vld [vmem:[#allocation7 + $0x38] sm:$0xff]  ;;  %v351_v49 = vld [vmem:[#allocation7 + $0x30] sm:$0xff] }
  0x1f   :  { %120 = vmatpush.msra.mxu0 %v99_v8  ;;  %866 = vmatpush.msra.mxu2 %v99_v8  ;;  %v350_v50 = vld [vmem:[#allocation7 + $0x28] sm:$0xff]  ;;  %v349_v51 = vld [vmem:[#allocation7 + $0x20] sm:$0xff]  ;;  %v348_v52 = vld [vmem:[#allocation7 + $0x18] sm:$0xff] }
  0x20   :  { %367 = vmatpush.msra.mxu1 %v358_v34  ;;  %876 = vmatpush.msra.mxu3 %v358_v34  ;;  %v347_v53 = vld [vmem:[#allocation7 + $0x10] sm:$0xff]  ;;  %v346_v54 = vld [vmem:[#allocation7 + $0x8] sm:$0xff]  ;;  %v345_v55 = vld [vmem:[#allocation7] sm:$0xff] }
  0x21   :  { %121 = vmatpush.msra.mxu0 %v98_v9  ;;  %867 = vmatpush.msra.mxu2 %v98_v9  ;;  %v1153_v56 = vld [vmem:[%s1371_s2] ss:$0 sm:$0xff] }
  0x22   :  { %368 = vmatpush.msra.mxu1 %v357_v35  ;;  %877 = vmatpush.msra.mxu3 %v357_v35 }
  0x23   :  { %122 = vmatpush.msra.mxu0 %v97_v10  ;;  %868 = vmatpush.msra.mxu2 %v97_v10 }
  0x24   :  { %369 = vmatpush.msra.mxu1 %v356_v38  ;;  %878 = vmatpush.msra.mxu3 %v356_v38 }
  0x25   :  { %123 = vmatpush.msra.mxu0 %v96_v11  ;;  %869 = vmatpush.msra.mxu2 %v96_v11 }
  0x26   :  { %370 = vmatpush.msra.mxu1 %v355_v39  ;;  %879 = vmatpush.msra.mxu3 %v355_v39 }
  0x27   :  { %124 = vmatpush.msra.mxu0 %v95_v12  ;;  %870 = vmatpush.msra.mxu2 %v95_v12 }
  0x28   :  { %371 = vmatpush.msra.mxu1 %v354_v40  ;;  %880 = vmatpush.msra.mxu3 %v354_v40 }
  0x29   :  { %125 = vmatpush.msra.mxu0 %v94_v13  ;;  %871 = vmatpush.msra.mxu2 %v94_v13 }
  0x2a   :  { %372 = vmatpush.msra.mxu1 %v353_v47  ;;  %881 = vmatpush.msra.mxu3 %v353_v47 }
  0x2b   :  { %126 = vmatpush.msra.mxu0 %v93_v14  ;;  %872 = vmatpush.msra.mxu2 %v93_v14 }
  0x2c   :  { %373 = vmatpush.msra.mxu1 %v352_v48  ;;  %882 = vmatpush.msra.mxu3 %v352_v48 }
  0x2d   :  { %127 = vmatpush.msra.mxu0 %v92_v15  ;;  %873 = vmatpush.msra.mxu2 %v92_v15 }
  0x2e   :  { %128 = vmatmul.f32.vlgmr.msra.gmra.mxu0 %v68_v16  ;;  %164 = vmatmul.f32.vlgmr.msra.gmra.mxu2 %v80_v17 }
  0x2f   :  { %374 = vmatpush.msra.mxu1 %v351_v49  ;;  %883 = vmatpush.msra.mxu3 %v351_v49 }
  0x31   :  { %375 = vmatpush.msra.mxu1 %v350_v50  ;;  %884 = vmatpush.msra.mxu3 %v350_v50 }
  0x33   :  { %376 = vmatpush.msra.mxu1 %v349_v51  ;;  %885 = vmatpush.msra.mxu3 %v349_v51 }
  0x35   :  { %377 = vmatpush.msra.mxu1 %v348_v52  ;;  %886 = vmatpush.msra.mxu3 %v348_v52 }
  0x36   :  { %131 = vmatmul.f32.gmra.mxu0 %v69_v18  ;;  %167 = vmatmul.f32.gmra.mxu2 %v81_v19 }
  0x37   :  { %378 = vmatpush.msra.mxu1 %v347_v53  ;;  %887 = vmatpush.msra.mxu3 %v347_v53 }
  0x39   :  { %379 = vmatpush.msra.mxu1 %v346_v54  ;;  %888 = vmatpush.msra.mxu3 %v346_v54 }
  0x3b   :  { %380 = vmatpush.msra.mxu1 %v345_v55  ;;  %889 = vmatpush.msra.mxu3 %v345_v55 }
  0x3e   :  { %134 = vmatmul.f32.gmra.mxu0 %v70_v20  ;;  %170 = vmatmul.f32.gmra.mxu2 %v82_v21 }
  0x46   :  { %137 = vmatmul.f32.gmra.mxu0 %v71_v22  ;;  %173 = vmatmul.f32.gmra.mxu2 %v83_v23 }
  0x4e   :  { %140 = vmatmul.f32.gmra.mxu0 %v72_v24  ;;  %176 = vmatmul.f32.gmra.mxu2 %v84_v25 }
  0x56   :  { %143 = vmatmul.f32.gmra.mxu0 %v73_v26  ;;  %179 = vmatmul.f32.gmra.mxu2 %v85_v27 }
  0x5e   :  { %146 = vmatmul.f32.gmra.mxu0 %v74_v28  ;;  %182 = vmatmul.f32.gmra.mxu2 %v86_v29 }
  0x66   :  { %149 = vmatmul.f32.gmra.mxu0 %v75_v30  ;;  %185 = vmatmul.f32.gmra.mxu2 %v87_v31 }
  0x6e   :  { %152 = vmatmul.f32.gmra.mxu0 %v76_v36  ;;  %188 = vmatmul.f32.gmra.mxu2 %v88_v37 }
  0x76   :  { %155 = vmatmul.f32.gmra.mxu0 %v77_v41  ;;  %191 = vmatmul.f32.gmra.mxu2 %v89_v42 }
  0x7e   :  { %158 = vmatmul.f32.gmra.mxu0 %v78_v43  ;;  %194 = vmatmul.f32.gmra.mxu2 %v90_v44 }
  0x86   :  { %161 = vmatmul.f32.gmra.mxu0 %v79_v45  ;;  %197 = vmatmul.f32.gmra.mxu2 %v91_v46 }
  0xab   :  { %v129_v57 = vpop.f32.mrf.mxu0 }
  0xac   :  { %v130_v58 = vadd.f32 %v1153_v56, %v129_v57 }
  0xae   :  { %v225_v59 = vmin.f32 %v130_v58, 0.0  ;;  %vm201_vm0 = vcmp.gt.f32.partialorder %v130_v58, 0.0 }
  0xb0   :  { %v249_v60 = vmul.f32 1.442695, %v225_v59 }
  0xb1   :  { %v165_v61 = vpop.f32.mrf.mxu2 }
  0xb2   :  { %898 = vpow2.f32 %v249_v60  ;;  %v166_v62 = vadd.f32 %v1153_v56, %v165_v61 }
  0xb3   :  { %v132_v63 = vpop.f32.mrf.mxu0 }
  0xb4   :  { %v237_v0 = vmin.f32 %v166_v62, 0.0  ;;  %v133_v1 = vadd.f32 %v1153_v56, %v132_v63  ;;  %vm213_vm1 = vcmp.gt.f32.partialorder %v166_v62, 0.0 }
  0xb6   :  { %v273_v2 = vmul.f32 1.442695, %v237_v0  ;;  %v226_v3 = vmin.f32 %v133_v1, 0.0  ;;  %vm202_vm2 = vcmp.gt.f32.partialorder %v133_v1, 0.0 }
  0xb8   :  { %v899_v4 = vpop.eup %898  ;;  %900 = vpow2.f32 %v273_v2  ;;  %v251_v5 = vmul.f32 1.442695, %v226_v3 }
  0xb9   :  { %v168_v6 = vpop.f32.mrf.mxu2  ;;  %v834_v7 = vadd.f32 -1.0, %v899_v4 }
  0xba   :  { %902 = vpow2.f32 %v251_v5  ;;  %v169_v8 = vadd.f32 %v1153_v56, %v168_v6 }
  0xbb   :  { %v135_v9 = vpop.f32.mrf.mxu0  ;;  %v321_v10 = vsel %vm201_vm0, %v130_v58, %v834_v7 }
  0xbc   :  { %v238_v11 = vmin.f32 %v169_v8, 0.0  ;;  %v136_v12 = vadd.f32 %v1153_v56, %v135_v9  ;;  %381 = vmatmul.f32.vlgmr.msra.gmra.mxu1 %v321_v10  ;;  %vm214_vm3 = vcmp.gt.f32.partialorder %v169_v8, 0.0 }
  0xbe   :  { %v901_v13 = vpop.eup %900  ;;  %v275_v14 = vmul.f32 1.442695, %v238_v11  ;;  %v227_v15 = vmin.f32 %v136_v12, 0.0  ;;  %vm203_vm4 = vcmp.gt.f32.partialorder %v136_v12, 0.0 }
  0xbf   :  { %v846_v16 = vadd.f32 -1.0, %v901_v13 }
  0xc0   :  { %v903_v17 = vpop.eup %902  ;;  %904 = vpow2.f32 %v275_v14  ;;  %v253_v18 = vmul.f32 1.442695, %v227_v15 }
  0xc1   :  { %v171_v19 = vpop.f32.mrf.mxu2  ;;  %v333_v20 = vsel %vm213_vm1, %v166_v62, %v846_v16  ;;  %v835_v21 = vadd.f32 -1.0, %v903_v17 }
  0xc2   :  { %906 = vpow2.f32 %v253_v18  ;;  %v172_v22 = vadd.f32 %v1153_v56, %v171_v19  ;;  %417 = vmatmul.f32.vlgmr.msra.gmra.mxu3 %v333_v20 }
  0xc3   :  { %v138_v23 = vpop.f32.mrf.mxu0  ;;  %v322_v24 = vsel %vm202_vm2, %v133_v1, %v835_v21 }
  0xc4   :  { %v239_v25 = vmin.f32 %v172_v22, 0.0  ;;  %v139_v26 = vadd.f32 %v1153_v56, %v138_v23  ;;  %384 = vmatmul.f32.gmra.mxu1 %v322_v24  ;;  %vm215_vm5 = vcmp.gt.f32.partialorder %v172_v22, 0.0 }
  0xc6   :  { %v905_v27 = vpop.eup %904  ;;  %v277_v28 = vmul.f32 1.442695, %v239_v25  ;;  %v228_v29 = vmin.f32 %v139_v26, 0.0  ;;  %vm204_vm6 = vcmp.gt.f32.partialorder %v139_v26, 0.0 }
  0xc7   :  { %v847_v30 = vadd.f32 -1.0, %v905_v27 }
  0xc8   :  { %v907_v31 = vpop.eup %906  ;;  %908 = vpow2.f32 %v277_v28  ;;  %v255_v32 = vmul.f32 1.442695, %v228_v29 }
  0xc9   :  { %v174_v33 = vpop.f32.mrf.mxu2  ;;  %v334_v34 = vsel %vm214_vm3, %v169_v8, %v847_v30  ;;  %v836_v35 = vadd.f32 -1.0, %v907_v31 }
  0xca   :  { %910 = vpow2.f32 %v255_v32  ;;  %v175_v36 = vadd.f32 %v1153_v56, %v174_v33  ;;  %420 = vmatmul.f32.gmra.mxu3 %v334_v34 }
  0xcb   :  { %v141_v37 = vpop.f32.mrf.mxu0  ;;  %v323_v38 = vsel %vm203_vm4, %v136_v12, %v836_v35 }
  0xcc   :  { %v240_v39 = vmin.f32 %v175_v36, 0.0  ;;  %v142_v40 = vadd.f32 %v1153_v56, %v141_v37  ;;  %387 = vmatmul.f32.gmra.mxu1 %v323_v38  ;;  %vm216_vm7 = vcmp.gt.f32.partialorder %v175_v36, 0.0 }
  0xce   :  { %v909_v41 = vpop.eup %908  ;;  %v279_v42 = vmul.f32 1.442695, %v240_v39  ;;  %v229_v43 = vmin.f32 %v142_v40, 0.0  ;;  %vm205_vm8 = vcmp.gt.f32.partialorder %v142_v40, 0.0 }
  0xcf   :  { %v848_v44 = vadd.f32 -1.0, %v909_v41 }
  0xd0   :  { %v911_v45 = vpop.eup %910  ;;  %912 = vpow2.f32 %v279_v42  ;;  %v257_v46 = vmul.f32 1.442695, %v229_v43 }
  0xd1   :  { %v177_v47 = vpop.f32.mrf.mxu2  ;;  %v335_v48 = vsel %vm215_vm5, %v172_v22, %v848_v44  ;;  %v837_v49 = vadd.f32 -1.0, %v911_v45 }
  0xd2   :  { %914 = vpow2.f32 %v257_v46  ;;  %v178_v50 = vadd.f32 %v1153_v56, %v177_v47  ;;  %423 = vmatmul.f32.gmra.mxu3 %v335_v48 }
  0xd3   :  { %v144_v51 = vpop.f32.mrf.mxu0  ;;  %v324_v52 = vsel %vm204_vm6, %v139_v26, %v837_v49 }
  0xd4   :  { %v241_v53 = vmin.f32 %v178_v50, 0.0  ;;  %v145_v54 = vadd.f32 %v1153_v56, %v144_v51  ;;  %390 = vmatmul.f32.gmra.mxu1 %v324_v52  ;;  %vm217_vm9 = vcmp.gt.f32.partialorder %v178_v50, 0.0 }
  0xd6   :  { %v913_v55 = vpop.eup %912  ;;  %v281_v57 = vmul.f32 1.442695, %v241_v53  ;;  %v230_v58 = vmin.f32 %v145_v54, 0.0  ;;  %vm206_vm10 = vcmp.gt.f32.partialorder %v145_v54, 0.0 }
  0xd7   :  { %v849_v59 = vadd.f32 -1.0, %v913_v55 }
  0xd8   :  { %v915_v60 = vpop.eup %914  ;;  %916 = vpow2.f32 %v281_v57  ;;  %v259_v61 = vmul.f32 1.442695, %v230_v58 }
  0xd9   :  { %v180_v62 = vpop.f32.mrf.mxu2  ;;  %v336_v63 = vsel %vm216_vm7, %v175_v36, %v849_v59  ;;  %v838_v0 = vadd.f32 -1.0, %v915_v60 }
  0xda   :  { %918 = vpow2.f32 %v259_v61  ;;  %v181_v1 = vadd.f32 %v1153_v56, %v180_v62  ;;  %426 = vmatmul.f32.gmra.mxu3 %v336_v63 }
  0xdb   :  { %v147_v2 = vpop.f32.mrf.mxu0  ;;  %v325_v3 = vsel %vm205_vm8, %v142_v40, %v838_v0 }
  0xdc   :  { %v242_v4 = vmin.f32 %v181_v1, 0.0  ;;  %v148_v5 = vadd.f32 %v1153_v56, %v147_v2  ;;  %393 = vmatmul.f32.gmra.mxu1 %v325_v3  ;;  %vm218_vm11 = vcmp.gt.f32.partialorder %v181_v1, 0.0 }
  0xde   :  { %v917_v6 = vpop.eup %916  ;;  %v283_v7 = vmul.f32 1.442695, %v242_v4  ;;  %v231_v8 = vmin.f32 %v148_v5, 0.0  ;;  %vm207_vm12 = vcmp.gt.f32.partialorder %v148_v5, 0.0 }
  0xdf   :  { %v850_v9 = vadd.f32 -1.0, %v917_v6 }
  0xe0   :  { %v919_v10 = vpop.eup %918  ;;  %920 = vpow2.f32 %v283_v7  ;;  %v261_v11 = vmul.f32 1.442695, %v231_v8 }
  0xe1   :  { %v183_v12 = vpop.f32.mrf.mxu2  ;;  %v337_v13 = vsel %vm217_vm9, %v178_v50, %v850_v9  ;;  %v839_v14 = vadd.f32 -1.0, %v919_v10 }
  0xe2   :  { %922 = vpow2.f32 %v261_v11  ;;  %v184_v15 = vadd.f32 %v1153_v56, %v183_v12  ;;  %429 = vmatmul.f32.gmra.mxu3 %v337_v13 }
  0xe3   :  { %v150_v16 = vpop.f32.mrf.mxu0  ;;  %v326_v17 = vsel %vm206_vm10, %v145_v54, %v839_v14 }
  0xe4   :  { %v243_v18 = vmin.f32 %v184_v15, 0.0  ;;  %v151_v19 = vadd.f32 %v1153_v56, %v150_v16  ;;  %396 = vmatmul.f32.gmra.mxu1 %v326_v17  ;;  %vm219_vm13 = vcmp.gt.f32.partialorder %v184_v15, 0.0 }
  0xe6   :  { %v921_v20 = vpop.eup %920  ;;  %v285_v21 = vmul.f32 1.442695, %v243_v18  ;;  %v232_v22 = vmin.f32 %v151_v19, 0.0  ;;  %vm208_vm14 = vcmp.gt.f32.partialorder %v151_v19, 0.0 }
  0xe7   :  { %v851_v23 = vadd.f32 -1.0, %v921_v20 }
  0xe8   :  { %v923_v24 = vpop.eup %922  ;;  %924 = vpow2.f32 %v285_v21  ;;  %v263_v25 = vmul.f32 1.442695, %v232_v22 }
  0xe9   :  { %v186_v26 = vpop.f32.mrf.mxu2  ;;  %v338_v27 = vsel %vm218_vm11, %v181_v1, %v851_v23  ;;  %v840_v28 = vadd.f32 -1.0, %v923_v24 }
  0xea   :  { %926 = vpow2.f32 %v263_v25  ;;  %v187_v29 = vadd.f32 %v1153_v56, %v186_v26  ;;  %432 = vmatmul.f32.gmra.mxu3 %v338_v27 }
  0xeb   :  { %v153_v30 = vpop.f32.mrf.mxu0  ;;  %v327_v31 = vsel %vm207_vm12, %v148_v5, %v840_v28 }
  0xec   :  { %v244_v32 = vmin.f32 %v187_v29, 0.0  ;;  %v154_v33 = vadd.f32 %v1153_v56, %v153_v30  ;;  %399 = vmatmul.f32.gmra.mxu1 %v327_v31  ;;  %vm220_vm15 = vcmp.gt.f32.partialorder %v187_v29, 0.0 }
  0xee   :  { %v925_v34 = vpop.eup %924  ;;  %v287_v35 = vmul.f32 1.442695, %v244_v32  ;;  %v233_v36 = vmin.f32 %v154_v33, 0.0  ;;  %vm209_vm0 = vcmp.gt.f32.partialorder %v154_v33, 0.0 }
  0xef   :  { %v852_v37 = vadd.f32 -1.0, %v925_v34  ;;  %v1182_v34 = vld [vmem:[%s1373_s4] ss:$0 sm:$0xff]  ;;  %s1101_s4 = smov [#allocation8]  }
  0xf0   :  { %v927_v38 = vpop.eup %926  ;;  %928 = vpow2.f32 %v287_v35  ;;  %v265_v39 = vmul.f32 1.442695, %v233_v36  ;;  %s818_s10 = sshll.u32 %s1101_s4, 4  ;;  %s819_s10 = int_to_ptr.vmem [resolvable:$true] %s818_s10 }
  0xf1   :  { %v189_v40 = vpop.f32.mrf.mxu2  ;;  %v339_v41 = vsel %vm219_vm13, %v184_v15, %v852_v37  ;;  %v841_v42 = vadd.f32 -1.0, %v927_v38 }
  0xf2   :  { %930 = vpow2.f32 %v265_v39  ;;  %v190_v43 = vadd.f32 %v1153_v56, %v189_v40  ;;  %435 = vmatmul.f32.gmra.mxu3 %v339_v41 }
  0xf3   :  { %v156_v44 = vpop.f32.mrf.mxu0  ;;  %v328_v45 = vsel %vm208_vm14, %v151_v19, %v841_v42 }
  0xf4   :  { %v245_v46 = vmin.f32 %v190_v43, 0.0  ;;  %v157_v47 = vadd.f32 %v1153_v56, %v156_v44  ;;  %402 = vmatmul.f32.gmra.mxu1 %v328_v45  ;;  %vm221_vm1 = vcmp.gt.f32.partialorder %v190_v43, 0.0 }
  0xf6   :  { %v929_v48 = vpop.eup %928  ;;  %v289_v49 = vmul.f32 1.442695, %v245_v46  ;;  %v234_v50 = vmin.f32 %v157_v47, 0.0  ;;  %vm210_vm2 = vcmp.gt.f32.partialorder %v157_v47, 0.0 }
  0xf7   :  { %v853_v51 = vadd.f32 -1.0, %v929_v48 }
  0xf8   :  { %v931_v52 = vpop.eup %930  ;;  %932 = vpow2.f32 %v289_v49  ;;  %v267_v53 = vmul.f32 1.442695, %v234_v50 }
  0xf9   :  { %v192_v54 = vpop.f32.mrf.mxu2  ;;  %v340_v55 = vsel %vm220_vm15, %v187_v29, %v853_v51  ;;  %v842_v57 = vadd.f32 -1.0, %v931_v52 }
  0xfa   :  { %934 = vpow2.f32 %v267_v53  ;;  %v193_v58 = vadd.f32 %v1153_v56, %v192_v54  ;;  %438 = vmatmul.f32.gmra.mxu3 %v340_v55 }
  0xfb   :  { %v159_v59 = vpop.f32.mrf.mxu0  ;;  %v329_v60 = vsel %vm209_vm0, %v154_v33, %v842_v57 }
  0xfc   :  { %v246_v61 = vmin.f32 %v193_v58, 0.0  ;;  %v160_v62 = vadd.f32 %v1153_v56, %v159_v59  ;;  %405 = vmatmul.f32.gmra.mxu1 %v329_v60  ;;  %vm222_vm3 = vcmp.gt.f32.partialorder %v193_v58, 0.0 }
  0xfe   :  { %v933_v63 = vpop.eup %932  ;;  %v291_v0 = vmul.f32 1.442695, %v246_v61  ;;  %v235_v1 = vmin.f32 %v160_v62, 0.0  ;;  %vm211_vm4 = vcmp.gt.f32.partialorder %v160_v62, 0.0 }
  0xff   :  { %v854_v2 = vadd.f32 -1.0, %v933_v63 }
 0x100   :  { %v935_v3 = vpop.eup %934  ;;  %936 = vpow2.f32 %v291_v0  ;;  %v269_v4 = vmul.f32 1.442695, %v235_v1 }
 0x101   :  { %v195_v5 = vpop.f32.mrf.mxu2  ;;  %v341_v6 = vsel %vm221_vm1, %v190_v43, %v854_v2  ;;  %v843_v7 = vadd.f32 -1.0, %v935_v3 }
 0x102   :  { %938 = vpow2.f32 %v269_v4  ;;  %v196_v8 = vadd.f32 %v1153_v56, %v195_v5  ;;  %441 = vmatmul.f32.gmra.mxu3 %v341_v6 }
 0x103   :  { %v162_v9 = vpop.f32.mrf.mxu0  ;;  %v330_v10 = vsel %vm210_vm2, %v157_v47, %v843_v7 }
 0x104   :  { %v247_v11 = vmin.f32 %v196_v8, 0.0  ;;  %v163_v12 = vadd.f32 %v1153_v56, %v162_v9  ;;  %408 = vmatmul.f32.gmra.mxu1 %v330_v10  ;;  %vm223_vm5 = vcmp.gt.f32.partialorder %v196_v8, 0.0 }
 0x106   :  { %v937_v13 = vpop.eup %936  ;;  %v293_v14 = vmul.f32 1.442695, %v247_v11  ;;  %v236_v15 = vmin.f32 %v163_v12, 0.0  ;;  %vm212_vm6 = vcmp.gt.f32.partialorder %v163_v12, 0.0 }
 0x107   :  { %v855_v16 = vadd.f32 -1.0, %v937_v13 }
 0x108   :  { %v939_v17 = vpop.eup %938  ;;  %940 = vpow2.f32 %v293_v14  ;;  %v271_v18 = vmul.f32 1.442695, %v236_v15 }
 0x109   :  { %v198_v19 = vpop.f32.mrf.mxu2  ;;  %v342_v20 = vsel %vm222_vm3, %v193_v58, %v855_v16  ;;  %v844_v21 = vadd.f32 -1.0, %v939_v17 }
 0x10a   :  { %942 = vpow2.f32 %v271_v18  ;;  %v199_v22 = vadd.f32 %v1153_v56, %v198_v19  ;;  %444 = vmatmul.f32.gmra.mxu3 %v342_v20 }
 0x10b   :  { %v331_v23 = vsel %vm211_vm4, %v160_v62, %v844_v21 }
 0x10c   :  { %v248_v24 = vmin.f32 %v199_v22, 0.0  ;;  %411 = vmatmul.f32.gmra.mxu1 %v331_v23  ;;  %vm224_vm7 = vcmp.gt.f32.partialorder %v199_v22, 0.0 }
 0x10e   :  { %v941_v25 = vpop.eup %940  ;;  %v295_v26 = vmul.f32 1.442695, %v248_v24 }
 0x10f   :  { %v856_v27 = vadd.f32 -1.0, %v941_v25 }
 0x110   :  { %v943_v28 = vpop.eup %942  ;;  %944 = vpow2.f32 %v295_v26 }
 0x111   :  { %v343_v29 = vsel %vm223_vm5, %v196_v8, %v856_v27  ;;  %v845_v30 = vadd.f32 -1.0, %v943_v28 }
 0x112   :  { %447 = vmatmul.f32.gmra.mxu3 %v343_v29 }
 0x113   :  { %v332_v31 = vsel %vm212_vm6, %v163_v12, %v845_v30 }
 0x114   :  { %414 = vmatmul.f32.gmra.mxu1 %v332_v31 }
 0x116   :  { %v945_v32 = vpop.eup %944 }
 0x117   :  { %v857_v33 = vadd.f32 -1.0, %v945_v32 }
 0x119   :  { %v344_v56 = vsel %vm224_vm7, %v199_v22, %v857_v33 }
 0x11a   :  { %450 = vmatmul.f32.gmra.mxu3 %v344_v56 }
 0x139   :  { %v382_v35 = vpop.f32.mrf.mxu1 }
 0x13a   :  { %v1185_v36 = vadd.f32 %v1182_v34, %v382_v35 }
 0x13c   :  { %v454_v37 = vmul.f32 %v1185_v36, %v1185_v36 }
 0x13e   :  { %478 = vadd.xlane.f32.xlu0 %v454_v37 }
 0x141   :  { %v385_v38 = vpop.f32.mrf.mxu1 }
 0x142   :  { %v1190_v39 = vadd.f32 %v1182_v34, %v385_v38 }
 0x144   :  { %v455_v40 = vmul.f32 %v1190_v39, %v1190_v39 }
 0x145   :  { %v418_v41 = vpop.f32.mrf.mxu3 }
 0x146   :  { %480 = vadd.xlane.f32.xlu0 %v455_v40  ;;  %v1195_v42 = vadd.f32 %v1182_v34, %v418_v41 }
 0x148   :  { %v466_v46 = vmul.f32 %v1195_v42, %v1195_v42 }
 0x149   :  { %v388_v43 = vpop.f32.mrf.mxu1 }
 0x14a   :  { %v1198_v44 = vadd.f32 %v1182_v34, %v388_v43 }
 0x14c   :  { %v456_v45 = vmul.f32 %v1198_v44, %v1198_v44 }
 0x14d   :  { %v421_v47 = vpop.f32.mrf.mxu3 }
 0x14e   :  { %482 = vadd.xlane.f32.xlu1 %v456_v45  ;;  %502 = vadd.xlane.f32.xlu0 %v466_v46  ;;  %v1205_v48 = vadd.f32 %v1182_v34, %v421_v47 }
 0x150   :  { %v467_v50 = vmul.f32 %v1205_v48, %v1205_v48 }
 0x151   :  { %v391_v49 = vpop.f32.mrf.mxu1 }
 0x152   :  { %v1213_v53 = vadd.f32 %v1182_v34, %v391_v49 }
 0x154   :  { %v457_v58 = vmul.f32 %v1213_v53, %v1213_v53 }
 0x155   :  { %v424_v51 = vpop.f32.mrf.mxu3 }
 0x156   :  { %v1210_v52 = vadd.f32 %v1182_v34, %v424_v51  ;;  %504 = vadd.xlane.f32.xlu1 %v467_v50 }
 0x158   :  { %v468_v54 = vmul.f32 %v1210_v52, %v1210_v52 }
 0x159   :  { %v394_v55 = vpop.f32.mrf.mxu1 }
 0x15a   :  { %506 = vadd.xlane.f32.xlu2 %v468_v54  ;;  %v1218_v57 = vadd.f32 %v1182_v34, %v394_v55 }
 0x15c   :  { %v458_v61 = vmul.f32 %v1218_v57, %v1218_v57 }
 0x15d   :  { %v427_v59 = vpop.f32.mrf.mxu3 }
 0x15e   :  { %v1223_v60 = vadd.f32 %v1182_v34, %v427_v59  ;;  %484 = vadd.xlane.f32.xlu1 %v457_v58 }
 0x160   :  { %v469_v62 = vmul.f32 %v1223_v60, %v1223_v60 }
 0x161   :  { %v397_v63 = vpop.f32.mrf.mxu1 }
 0x162   :  { %486 = vadd.xlane.f32.xlu2 %v458_v61  ;;  %508 = vadd.xlane.f32.xlu0 %v469_v62  ;;  %v1230_v0 = vadd.f32 %v1182_v34, %v397_v63 }
 0x164   :  { %v459_v3 = vmul.f32 %v1230_v0, %v1230_v0 }
 0x165   :  { %v430_v1 = vpop.f32.mrf.mxu3 }
 0x166   :  { %v1233_v2 = vadd.f32 %v1182_v34, %v430_v1 }
 0x168   :  { %v470_v4 = vmul.f32 %v1233_v2, %v1233_v2 }
 0x169   :  { %v400_v5 = vpop.f32.mrf.mxu1 }
 0x16a   :  { %v1240_v6 = vadd.f32 %v1182_v34, %v400_v5  ;;  %488 = vadd.xlane.f32.xlu2 %v459_v3  ;;  %510 = vadd.xlane.f32.xlu1 %v470_v4 }
 0x16c   :  { %v460_v7 = vmul.f32 %v1240_v6, %v1240_v6 }
 0x16d   :  { %v433_v8 = vpop.f32.mrf.mxu3 }
 0x16e   :  { %v1245_v9 = vadd.f32 %v1182_v34, %v433_v8  ;;  %490 = vadd.xlane.f32.xlu0 %v460_v7 }
 0x170   :  { %v471_v10 = vmul.f32 %v1245_v9, %v1245_v9 }
 0x171   :  { %v403_v11 = vpop.f32.mrf.mxu1 }
 0x172   :  { %v1250_v12 = vadd.f32 %v1182_v34, %v403_v11  ;;  %512 = vadd.xlane.f32.xlu2 %v471_v10 }
 0x174   :  { %v461_v13 = vmul.f32 %v1250_v12, %v1250_v12 }
 0x175   :  { %v436_v14 = vpop.f32.mrf.mxu3 }
 0x176   :  { %v1255_v15 = vadd.f32 %v1182_v34, %v436_v14  ;;  %492 = vadd.xlane.f32.xlu1 %v461_v13 }
 0x178   :  { %v472_v16 = vmul.f32 %v1255_v15, %v1255_v15 }
 0x179   :  { %v406_v17 = vpop.f32.mrf.mxu1 }
 0x17a   :  { %v1260_v18 = vadd.f32 %v1182_v34, %v406_v17  ;;  %514 = vadd.xlane.f32.xlu0 %v472_v16 }
 0x17c   :  { %v462_v19 = vmul.f32 %v1260_v18, %v1260_v18 }
 0x17d   :  { %v439_v20 = vpop.f32.mrf.mxu3 }
 0x17e   :  { %v1265_v21 = vadd.f32 %v1182_v34, %v439_v20  ;;  %494 = vadd.xlane.f32.xlu2 %v462_v19 }
 0x180   :  { %v473_v22 = vmul.f32 %v1265_v21, %v1265_v21 }
 0x181   :  { %v409_v23 = vpop.f32.mrf.mxu1 }
 0x182   :  { %v1270_v24 = vadd.f32 %v1182_v34, %v409_v23  ;;  %516 = vadd.xlane.f32.xlu1 %v473_v22 }
 0x184   :  { %v463_v25 = vmul.f32 %v1270_v24, %v1270_v24 }
 0x185   :  { %v442_v26 = vpop.f32.mrf.mxu3 }
 0x186   :  { %v1275_v27 = vadd.f32 %v1182_v34, %v442_v26  ;;  %496 = vadd.xlane.f32.xlu0 %v463_v25 }
 0x188   :  { %v474_v28 = vmul.f32 %v1275_v27, %v1275_v27 }
 0x189   :  { %v412_v29 = vpop.f32.mrf.mxu1 }
 0x18a   :  { %v1280_v30 = vadd.f32 %v1182_v34, %v412_v29  ;;  %518 = vadd.xlane.f32.xlu2 %v474_v28 }
 0x18c   :  { %v464_v31 = vmul.f32 %v1280_v30, %v1280_v30 }
 0x18d   :  { %v445_v32 = vpop.f32.mrf.mxu3 }
 0x18e   :  { %v1285_v33 = vadd.f32 %v1182_v34, %v445_v32  ;;  %498 = vadd.xlane.f32.xlu1 %v464_v31 }
 0x190   :  { %v475_v56 = vmul.f32 %v1285_v33, %v1285_v33 }
 0x191   :  { %v415_v35 = vpop.f32.mrf.mxu1 }
 0x192   :  { %v1290_v37 = vadd.f32 %v1182_v34, %v415_v35  ;;  %520 = vadd.xlane.f32.xlu0 %v475_v56 }
 0x194   :  { %v465_v38 = vmul.f32 %v1290_v37, %v1290_v37 }
 0x195   :  { %v448_v40 = vpop.f32.mrf.mxu3 }
 0x196   :  { %v1295_v41 = vadd.f32 %v1182_v34, %v448_v40  ;;  %500 = vadd.xlane.f32.xlu2 %v465_v38 }
 0x198   :  { %v476_v43 = vmul.f32 %v1295_v41, %v1295_v41 }
 0x19a   :  { %522 = vadd.xlane.f32.xlu1 %v476_v43 }
 0x19d   :  { %v451_v45 = vpop.f32.mrf.mxu3 }
 0x19e   :  { %v1300_v46 = vadd.f32 %v1182_v34, %v451_v45 }
 0x1a0   :  { %v477_v47 = vmul.f32 %v1300_v46, %v1300_v46 }
 0x1a2   :  { %524 = vadd.xlane.f32.xlu2 %v477_v47 }
 0x1b1   :  { %v479_v49 = vpop.xlane.xlu0 %478 }
 0x1b2   :  { %946 = vrsqrt.f32 %v479_v49  ;;  %vm532_vm9 = vweird.f32 %v479_v49 }
 0x1b8   :  { %v947_v50 = vpop.eup %946 }
 0x1b9   :  { %v527_v51 = vmul.f32 %v947_v50, %v479_v49  ;;  %v481_v54 = vpop.xlane.xlu0 %480  ;;  %vm533_vm8 = vweird.f32 %v947_v50 }
 0x1ba   :  { %948 = vrsqrt.f32 %v481_v54  ;;  %vm534_vm10 = vmor %vm532_vm9, %vm533_vm8  ;;  %vm542_vm12 = vweird.f32 %v481_v54 }
 0x1bb   :  { %v528_v55 = vmul.f32 %v947_v50, %v527_v51 }
 0x1bd   :  { %v529_v58 = vmul.f32 0.5, %v528_v55 }
 0x1bf   :  { %v530_v59 = vsub.f32 1.5, %v529_v58 }
 0x1c0   :  { %v949_v61 = vpop.eup %948 }
 0x1c1   :  { %v531_v62 = vmul.f32 %v947_v50, %v530_v59  ;;  %v537_v63 = vmul.f32 %v949_v61, %v481_v54  ;;  %v483_v34 = vpop.xlane.xlu1 %482  ;;  %v503_v1 = vpop.xlane.xlu0 %502  ;;  %vm543_vm11 = vweird.f32 %v949_v61 }
 0x1c2   :  { %950 = vrsqrt.f32 %v483_v34  ;;  %vm544_vm13 = vmor %vm542_vm12, %vm543_vm11  ;;  %vm552_vm0 = vweird.f32 %v483_v34  ;;  %vm652_vm2 = vweird.f32 %v503_v1 }
 0x1c3   :  { %v535_v3 = vsel %vm534_vm10, %v947_v50, %v531_v62  ;;  %v538_v4 = vmul.f32 %v949_v61, %v537_v63  ;;  %952 = vrsqrt.f32 %v503_v1 }
 0x1c4   :  { %v766_v5 = vmul.f32 %v535_v3, %v1185_v36 }
 0x1c5   :  { %v539_v7 = vmul.f32 0.5, %v538_v4 }
 0x1c6   :  { %790 = vst [vmem:[#allocation8] sm:$0xff] %v766_v5 }
 0x1c7   :  { %v540_v8 = vsub.f32 1.5, %v539_v7 }
 0x1c8   :  { %v951_v10 = vpop.eup %950 }
 0x1c9   :  { %v953_v11 = vpop.eup %952  ;;  %v541_v13 = vmul.f32 %v949_v61, %v540_v8  ;;  %v547_v14 = vmul.f32 %v951_v10, %v483_v34  ;;  %v505_v16 = vpop.xlane.xlu1 %504  ;;  %vm553_vm14 = vweird.f32 %v951_v10 }
 0x1ca   :  { %v647_v17 = vmul.f32 %v953_v11, %v503_v1  ;;  %954 = vrsqrt.f32 %v505_v16  ;;  %vm653_vm15 = vweird.f32 %v953_v11  ;;  %vm554_vm1 = vmor %vm552_vm0, %vm553_vm14  ;;  %vm662_vm5 = vweird.f32 %v505_v16 }
 0x1cb   :  { %v545_v19 = vsel %vm544_vm13, %v949_v61, %v541_v13  ;;  %v548_v20 = vmul.f32 %v951_v10, %v547_v14  ;;  %vm654_vm3 = vmor %vm652_vm2, %vm653_vm15 }
 0x1cc   :  { %v767_v22 = vmul.f32 %v545_v19, %v1190_v39  ;;  %v648_v23 = vmul.f32 %v953_v11, %v647_v17 }
 0x1cd   :  { %v549_v25 = vmul.f32 0.5, %v548_v20  ;;  %v507_v36 = vpop.xlane.xlu2 %506 }
 0x1ce   :  { %791 = vst [vmem:[#allocation8 + $0x8] sm:$0xff] %v767_v22  ;;  %v649_v26 = vmul.f32 0.5, %v648_v23  ;;  %956 = vrsqrt.f32 %v507_v36  ;;  %vm672_vm8 = vweird.f32 %v507_v36 }
 0x1cf   :  { %v550_v28 = vsub.f32 1.5, %v549_v25 }
 0x1d0   :  { %v955_v29 = vpop.eup %954  ;;  %v650_v31 = vsub.f32 1.5, %v649_v26 }
 0x1d1   :  { %v551_v32 = vmul.f32 %v951_v10, %v550_v28  ;;  %v657_v56 = vmul.f32 %v955_v29, %v505_v16  ;;  %v485_v35 = vpop.xlane.xlu1 %484  ;;  %vm663_vm4 = vweird.f32 %v955_v29 }
 0x1d2   :  { %v651_v38 = vmul.f32 %v953_v11, %v650_v31  ;;  %958 = vrsqrt.f32 %v485_v35  ;;  %vm664_vm6 = vmor %vm662_vm5, %vm663_vm4  ;;  %vm562_vm11 = vweird.f32 %v485_v35 }
 0x1d3   :  { %v555_v39 = vsel %vm554_vm1, %v951_v10, %v551_v32  ;;  %v658_v40 = vmul.f32 %v955_v29, %v657_v56 }
 0x1d4   :  { %v957_v43 = vpop.eup %956  ;;  %v768_v45 = vmul.f32 %v555_v39, %v1198_v44  ;;  %v655_v47 = vsel %vm654_vm3, %v953_v11, %v651_v38 }
 0x1d5   :  { %v778_v49 = vmul.f32 %v655_v47, %v1195_v42  ;;  %v659_v50 = vmul.f32 0.5, %v658_v40  ;;  %v667_v51 = vmul.f32 %v957_v43, %v507_v36  ;;  %v487_v54 = vpop.xlane.xlu2 %486  ;;  %v1308_v55 = vpop.xlane.xlu0 %508  ;;  %vm673_vm7 = vweird.f32 %v957_v43 }
 0x1d6   :  { %792 = vst [vmem:[#allocation8 + $0x10] sm:$0xff] %v768_v45  ;;  %960 = vrsqrt.f32 %v487_v54  ;;  %vm674_vm9 = vmor %vm672_vm8, %vm673_vm7  ;;  %vm572_vm15 = vweird.f32 %v487_v54  ;;  %vm682_vm1 = vweird.f32 %v1308_v55 }
 0x1d7   :  { %802 = vst [vmem:[#allocation8 + $0x60] sm:$0xff] %v778_v49  ;;  %v660_v58 = vsub.f32 1.5, %v659_v50  ;;  %v668_v59 = vmul.f32 %v957_v43, %v667_v51  ;;  %962 = vrsqrt.f32 %v1308_v55 }
 0x1d8   :  { %v959_v61 = vpop.eup %958 }
 0x1d9   :  { %v661_v62 = vmul.f32 %v955_v29, %v660_v58  ;;  %v669_v44 = vmul.f32 0.5, %v668_v59  ;;  %v557_v63 = vmul.f32 %v959_v61, %v485_v35  ;;  %vm563_vm10 = vweird.f32 %v959_v61 }
 0x1da   :  { %vm564_vm12 = vmor %vm562_vm11, %vm563_vm10 }
 0x1db   :  { %v665_v42 = vsel %vm664_vm6, %v955_v29, %v661_v62  ;;  %v670_v34 = vsub.f32 1.5, %v669_v44  ;;  %v558_v1 = vmul.f32 %v959_v61, %v557_v63 }
 0x1dc   :  { %v961_v3 = vpop.eup %960  ;;  %v779_v4 = vmul.f32 %v665_v42, %v1205_v48 }
 0x1dd   :  { %v963_v5 = vpop.eup %962  ;;  %v671_v7 = vmul.f32 %v957_v43, %v670_v34  ;;  %v559_v8 = vmul.f32 0.5, %v558_v1  ;;  %v567_v10 = vmul.f32 %v961_v3, %v487_v54  ;;  %v1312_v11 = vpop.xlane.xlu2 %488  ;;  %vm573_vm13 = vweird.f32 %v961_v3 }
 0x1de   :  { %v1314_v13 = vpop.xlane.xlu1 %510  ;;  %803 = vst [vmem:[#allocation8 + $0x68] sm:$0xff] %v779_v4  ;;  %v677_v14 = vmul.f32 %v963_v5, %v1308_v55  ;;  %964 = vrsqrt.f32 %v1312_v11  ;;  %vm683_vm14 = vweird.f32 %v963_v5  ;;  %vm574_vm0 = vmor %vm572_vm15, %vm573_vm13  ;;  %vm582_vm5 = vweird.f32 %v1312_v11 }
 0x1df   :  { %v675_v16 = vsel %vm674_vm9, %v957_v43, %v671_v7  ;;  %v560_v17 = vsub.f32 1.5, %v559_v8  ;;  %v568_v19 = vmul.f32 %v961_v3, %v567_v10  ;;  %966 = vrsqrt.f32 %v1314_v13  ;;  %vm684_vm2 = vmor %vm682_vm1, %vm683_vm14 }
 0x1e0   :  { %v780_v48 = vmul.f32 %v675_v16, %v1210_v52  ;;  %v678_v20 = vmul.f32 %v963_v5, %v677_v14  ;;  %vm692_vm7 = vweird.f32 %v1314_v13 }
 0x1e1   :  { %v561_v22 = vmul.f32 %v959_v61, %v560_v17  ;;  %v569_v23 = vmul.f32 0.5, %v568_v19  ;;  %v1320_v25 = vpop.xlane.xlu0 %490 }
 0x1e2   :  { %804 = vst [vmem:[#allocation8 + $0x70] sm:$0xff] %v780_v48  ;;  %v679_v36 = vmul.f32 0.5, %v678_v20  ;;  %968 = vrsqrt.f32 %v1320_v25  ;;  %vm592_vm10 = vweird.f32 %v1320_v25 }
 0x1e3   :  { %v565_v26 = vsel %vm564_vm12, %v959_v61, %v561_v22  ;;  %v570_v28 = vsub.f32 1.5, %v569_v23 }
 0x1e4   :  { %v965_v29 = vpop.eup %964  ;;  %v769_v31 = vmul.f32 %v565_v26, %v1213_v53  ;;  %v680_v32 = vsub.f32 1.5, %v679_v36 }
 0x1e5   :  { %v967_v52 = vpop.eup %966  ;;  %v571_v56 = vmul.f32 %v961_v3, %v570_v28  ;;  %v577_v35 = vmul.f32 %v965_v29, %v1312_v11  ;;  %v1325_v38 = vpop.xlane.xlu2 %512  ;;  %vm583_vm3 = vweird.f32 %v965_v29 }
 0x1e6   :  { %793 = vst [vmem:[#allocation8 + $0x18] sm:$0xff] %v769_v31  ;;  %v681_v39 = vmul.f32 %v963_v5, %v680_v32  ;;  %v687_v40 = vmul.f32 %v967_v52, %v1314_v13  ;;  %970 = vrsqrt.f32 %v1325_v38  ;;  %vm693_vm4 = vweird.f32 %v967_v52  ;;  %vm584_vm6 = vmor %vm582_vm5, %vm583_vm3 }
 0x1e7   :  { %v575_v43 = vsel %vm574_vm0, %v961_v3, %v571_v56  ;;  %v578_v53 = vmul.f32 %v965_v29, %v577_v35  ;;  %vm694_vm8 = vmor %vm692_vm7, %vm693_vm4  ;;  %vm702_vm13 = vweird.f32 %v1325_v38 }
 0x1e8   :  { %v969_v45 = vpop.eup %968  ;;  %v770_v47 = vmul.f32 %v575_v43, %v1218_v57  ;;  %v685_v49 = vsel %vm684_vm2, %v963_v5, %v681_v39  ;;  %v688_v50 = vmul.f32 %v967_v52, %v687_v40 }
 0x1e9   :  { %v781_v51 = vmul.f32 %v685_v49, %v1223_v60  ;;  %v579_v54 = vmul.f32 0.5, %v578_v53  ;;  %v587_v58 = vmul.f32 %v969_v45, %v1320_v25  ;;  %v1333_v59 = vpop.xlane.xlu1 %492  ;;  %vm593_vm9 = vweird.f32 %v969_v45 }
 0x1ea   :  { %794 = vst [vmem:[#allocation8 + $0x20] sm:$0xff] %v770_v47  ;;  %v689_v55 = vmul.f32 0.5, %v688_v50  ;;  %972 = vrsqrt.f32 %v1333_v59  ;;  %vm594_vm11 = vmor %vm592_vm10, %vm593_vm9  ;;  %vm602_vm0 = vweird.f32 %v1333_v59 }
 0x1eb   :  { %805 = vst [vmem:[#allocation8 + $0x78] sm:$0xff] %v781_v51  ;;  %v580_v61 = vsub.f32 1.5, %v579_v54  ;;  %v588_v62 = vmul.f32 %v969_v45, %v587_v58 }
 0x1ec   :  { %v971_v44 = vpop.eup %970  ;;  %v690_v63 = vsub.f32 1.5, %v689_v55 }
 0x1ed   :  { %v581_v57 = vmul.f32 %v965_v29, %v580_v61  ;;  %v589_v60 = vmul.f32 0.5, %v588_v62  ;;  %v697_v42 = vmul.f32 %v971_v44, %v1325_v38  ;;  %v1338_v34 = vpop.xlane.xlu0 %514  ;;  %vm703_vm12 = vweird.f32 %v971_v44 }
 0x1ee   :  { %v691_v1 = vmul.f32 %v967_v52, %v690_v63  ;;  %974 = vrsqrt.f32 %v1338_v34  ;;  %vm704_vm14 = vmor %vm702_vm13, %vm703_vm12  ;;  %vm712_vm3 = vweird.f32 %v1338_v34 }
 0x1ef   :  { %v585_v3 = vsel %vm584_vm6, %v965_v29, %v581_v57  ;;  %v590_v4 = vsub.f32 1.5, %v589_v60  ;;  %v698_v5 = vmul.f32 %v971_v44, %v697_v42 }
 0x1f0   :  { %v973_v7 = vpop.eup %972  ;;  %v771_v8 = vmul.f32 %v585_v3, %v1230_v0  ;;  %v695_v10 = vsel %vm694_vm8, %v967_v52, %v691_v1 }
 0x1f1   :  { %v782_v11 = vmul.f32 %v695_v10, %v1233_v2  ;;  %v591_v14 = vmul.f32 %v969_v45, %v590_v4  ;;  %v699_v16 = vmul.f32 0.5, %v698_v5  ;;  %v597_v17 = vmul.f32 %v973_v7, %v1333_v59  ;;  %v495_v13 = vpop.xlane.xlu2 %494 }
 0x1f2   :  { %795 = vst [vmem:[#allocation8 + $0x28] sm:$0xff] %v771_v8  ;;  %976 = vrsqrt.f32 %v495_v13  ;;  %vm603_vm15 = vweird.f32 %v973_v7  ;;  %vm612_vm6 = vweird.f32 %v495_v13 }
 0x1f3   :  { %806 = vst [vmem:[#allocation8 + $0x80] sm:$0xff] %v782_v11  ;;  %v595_v19 = vsel %vm594_vm11, %v969_v45, %v591_v14  ;;  %v700_v48 = vsub.f32 1.5, %v699_v16  ;;  %v598_v20 = vmul.f32 %v973_v7, %v597_v17  ;;  %vm604_vm1 = vmor %vm602_vm0, %vm603_vm15 }
 0x1f4   :  { %v975_v22 = vpop.eup %974  ;;  %v772_v0 = vmul.f32 %v595_v19, %v1240_v6 }
 0x1f5   :  { %v701_v23 = vmul.f32 %v971_v44, %v700_v48  ;;  %v599_v2 = vmul.f32 0.5, %v598_v20  ;;  %v707_v25 = vmul.f32 %v975_v22, %v1338_v34  ;;  %v517_v36 = vpop.xlane.xlu1 %516  ;;  %vm713_vm2 = vweird.f32 %v975_v22 }
 0x1f6   :  { %796 = vst [vmem:[#allocation8 + $0x30] sm:$0xff] %v772_v0  ;;  %978 = vrsqrt.f32 %v517_v36  ;;  %vm714_vm4 = vmor %vm712_vm3, %vm713_vm2  ;;  %vm722_vm9 = vweird.f32 %v517_v36 }
 0x1f7   :  { %v705_v26 = vsel %vm704_vm14, %v971_v44, %v701_v23  ;;  %v600_v28 = vsub.f32 1.5, %v599_v2  ;;  %v708_v29 = vmul.f32 %v975_v22, %v707_v25 }
 0x1f8   :  { %v977_v31 = vpop.eup %976  ;;  %v783_v32 = vmul.f32 %v705_v26, %v1245_v9 }
 0x1f9   :  { %v601_v52 = vmul.f32 %v973_v7, %v600_v28  ;;  %v709_v6 = vmul.f32 0.5, %v708_v29  ;;  %v607_v56 = vmul.f32 %v977_v31, %v495_v13  ;;  %v497_v35 = vpop.xlane.xlu0 %496  ;;  %vm613_vm5 = vweird.f32 %v977_v31 }
 0x1fa   :  { %807 = vst [vmem:[#allocation8 + $0x88] sm:$0xff] %v783_v32  ;;  %980 = vrsqrt.f32 %v497_v35  ;;  %vm614_vm7 = vmor %vm612_vm6, %vm613_vm5  ;;  %vm622_vm12 = vweird.f32 %v497_v35 }
 0x1fb   :  { %v605_v38 = vsel %vm604_vm1, %v973_v7, %v601_v52  ;;  %v710_v39 = vsub.f32 1.5, %v709_v6  ;;  %v608_v40 = vmul.f32 %v977_v31, %v607_v56 }
 0x1fc   :  { %v979_v43 = vpop.eup %978  ;;  %v773_v53 = vmul.f32 %v605_v38, %v1250_v12 }
 0x1fd   :  { %v711_v45 = vmul.f32 %v975_v22, %v710_v39  ;;  %v609_v9 = vmul.f32 0.5, %v608_v40  ;;  %v717_v47 = vmul.f32 %v979_v43, %v517_v36  ;;  %v519_v49 = vpop.xlane.xlu2 %518  ;;  %vm723_vm8 = vweird.f32 %v979_v43 }
 0x1fe   :  { %797 = vst [vmem:[#allocation8 + $0x38] sm:$0xff] %v773_v53  ;;  %982 = vrsqrt.f32 %v519_v49  ;;  %vm724_vm10 = vmor %vm722_vm9, %vm723_vm8  ;;  %vm732_vm15 = vweird.f32 %v519_v49 }
 0x1ff   :  { %v715_v50 = vsel %vm714_vm4, %v975_v22, %v711_v45  ;;  %v610_v51 = vsub.f32 1.5, %v609_v9  ;;  %v718_v54 = vmul.f32 %v979_v43, %v717_v47 }
 0x200   :  { %v981_v58 = vpop.eup %980  ;;  %v784_v59 = vmul.f32 %v715_v50, %v1255_v15 }
 0x201   :  { %v611_v55 = vmul.f32 %v977_v31, %v610_v51  ;;  %v719_v61 = vmul.f32 0.5, %v718_v54  ;;  %v617_v12 = vmul.f32 %v981_v58, %v497_v35  ;;  %v499_v62 = vpop.xlane.xlu1 %498  ;;  %vm623_vm11 = vweird.f32 %v981_v58 }
 0x202   :  { %808 = vst [vmem:[#allocation8 + $0x90] sm:$0xff] %v784_v59  ;;  %984 = vrsqrt.f32 %v499_v62  ;;  %vm624_vm13 = vmor %vm622_vm12, %vm623_vm11  ;;  %vm632_vm2 = vweird.f32 %v499_v62 }
 0x203   :  { %v615_v44 = vsel %vm614_vm7, %v977_v31, %v611_v55  ;;  %v720_v63 = vsub.f32 1.5, %v719_v61  ;;  %v618_v57 = vmul.f32 %v981_v58, %v617_v12 }
 0x204   :  { %v983_v60 = vpop.eup %982  ;;  %v774_v42 = vmul.f32 %v615_v44, %v1260_v18 }
 0x205   :  { %v721_v34 = vmul.f32 %v979_v43, %v720_v63  ;;  %v619_v1 = vmul.f32 0.5, %v618_v57  ;;  %v727_v3 = vmul.f32 %v983_v60, %v519_v49  ;;  %v521_v15 = vpop.xlane.xlu0 %520  ;;  %vm733_vm14 = vweird.f32 %v983_v60 }
 0x206   :  { %798 = vst [vmem:[#allocation8 + $0x40] sm:$0xff] %v774_v42  ;;  %986 = vrsqrt.f32 %v521_v15  ;;  %vm734_vm0 = vmor %vm732_vm15, %vm733_vm14  ;;  %vm742_vm5 = vweird.f32 %v521_v15 }
 0x207   :  { %v725_v4 = vsel %vm724_vm10, %v979_v43, %v721_v34  ;;  %v620_v5 = vsub.f32 1.5, %v619_v1  ;;  %v728_v7 = vmul.f32 %v983_v60, %v727_v3 }
 0x208   :  { %v985_v8 = vpop.eup %984  ;;  %v785_v10 = vmul.f32 %v725_v4, %v1265_v21 }
 0x209   :  { %v621_v11 = vmul.f32 %v981_v58, %v620_v5  ;;  %v729_v14 = vmul.f32 0.5, %v728_v7  ;;  %v627_v16 = vmul.f32 %v985_v8, %v499_v62  ;;  %v501_v18 = vpop.xlane.xlu2 %500  ;;  %vm633_vm1 = vweird.f32 %v985_v8 }
 0x20a   :  { %809 = vst [vmem:[#allocation8 + $0x98] sm:$0xff] %v785_v10  ;;  %988 = vrsqrt.f32 %v501_v18  ;;  %vm634_vm3 = vmor %vm632_vm2, %vm633_vm1  ;;  %vm642_vm8 = vweird.f32 %v501_v18 }
 0x20b   :  { %v625_v17 = vsel %vm624_vm13, %v981_v58, %v621_v11  ;;  %v730_v13 = vsub.f32 1.5, %v729_v14  ;;  %v628_v19 = vmul.f32 %v985_v8, %v627_v16 }
 0x20c   :  { %v987_v48 = vpop.eup %986  ;;  %v775_v20 = vmul.f32 %v625_v17, %v1270_v24 }
 0x20d   :  { %v731_v22 = vmul.f32 %v983_v60, %v730_v13  ;;  %v629_v0 = vmul.f32 0.5, %v628_v19  ;;  %v737_v23 = vmul.f32 %v987_v48, %v521_v15  ;;  %v523_v21 = vpop.xlane.xlu1 %522  ;;  %vm743_vm4 = vweird.f32 %v987_v48 }
 0x20e   :  { %799 = vst [vmem:[#allocation8 + $0x48] sm:$0xff] %v775_v20  ;;  %990 = vrsqrt.f32 %v523_v21  ;;  %vm744_vm6 = vmor %vm742_vm5, %vm743_vm4  ;;  %vm752_vm11 = vweird.f32 %v523_v21 }
 0x20f   :  { %v735_v2 = vsel %vm734_vm0, %v983_v60, %v731_v22  ;;  %v630_v25 = vsub.f32 1.5, %v629_v0  ;;  %v738_v36 = vmul.f32 %v987_v48, %v737_v23 }
 0x210   :  { %v989_v26 = vpop.eup %988  ;;  %v786_v28 = vmul.f32 %v735_v2, %v1275_v27 }
 0x211   :  { %v631_v29 = vmul.f32 %v985_v8, %v630_v25  ;;  %v739_v31 = vmul.f32 0.5, %v738_v36  ;;  %v637_v32 = vmul.f32 %v989_v26, %v501_v18  ;;  %vm643_vm7 = vweird.f32 %v989_v26 }
 0x212   :  { %810 = vst [vmem:[#allocation8 + $0xa0] sm:$0xff] %v786_v28  ;;  %vm644_vm9 = vmor %vm642_vm8, %vm643_vm7 }
 0x213   :  { %v635_v24 = vsel %vm634_vm3, %v985_v8, %v631_v29  ;;  %v740_v52 = vsub.f32 1.5, %v739_v31  ;;  %v638_v6 = vmul.f32 %v989_v26, %v637_v32 }
 0x214   :  { %v991_v56 = vpop.eup %990  ;;  %v776_v35 = vmul.f32 %v635_v24, %v1280_v30 }
 0x215   :  { %v741_v38 = vmul.f32 %v987_v48, %v740_v52  ;;  %v639_v39 = vmul.f32 0.5, %v638_v6  ;;  %v747_v40 = vmul.f32 %v991_v56, %v523_v21  ;;  %v525_v43 = vpop.xlane.xlu2 %524  ;;  %vm753_vm10 = vweird.f32 %v991_v56 }
 0x216   :  { %800 = vst [vmem:[#allocation8 + $0x50] sm:$0xff] %v776_v35  ;;  %992 = vrsqrt.f32 %v525_v43  ;;  %vm754_vm12 = vmor %vm752_vm11, %vm753_vm10  ;;  %vm762_vm14 = vweird.f32 %v525_v43 }
 0x217   :  { %v745_v27 = vsel %vm744_vm6, %v987_v48, %v741_v38  ;;  %v640_v53 = vsub.f32 1.5, %v639_v39  ;;  %v748_v45 = vmul.f32 %v991_v56, %v747_v40 }
 0x218   :  { %v787_v9 = vmul.f32 %v745_v27, %v1285_v33 }
 0x219   :  { %v641_v47 = vmul.f32 %v989_v26, %v640_v53  ;;  %v749_v49 = vmul.f32 0.5, %v748_v45 }
 0x21a   :  { %811 = vst [vmem:[#allocation8 + $0xa8] sm:$0xff] %v787_v9 }
 0x21b   :  { %v645_v30 = vsel %vm644_vm9, %v989_v26, %v641_v47  ;;  %v750_v50 = vsub.f32 1.5, %v749_v49 }
 0x21c   :  { %v993_v51 = vpop.eup %992  ;;  %v777_v54 = vmul.f32 %v645_v30, %v1290_v37 }
 0x21d   :  { %v751_v58 = vmul.f32 %v991_v56, %v750_v50  ;;  %v757_v59 = vmul.f32 %v993_v51, %v525_v43  ;;  %vm763_vm13 = vweird.f32 %v993_v51 }
 0x21e   :  { %801 = vst [vmem:[#allocation8 + $0x58] sm:$0xff] %v777_v54  ;;  %vm764_vm15 = vmor %vm762_vm14, %vm763_vm13 }
 0x21f   :  { %v755_v55 = vsel %vm754_vm12, %v991_v56, %v751_v58  ;;  %v758_v61 = vmul.f32 %v993_v51, %v757_v59 }
 0x220   :  { %v788_v33 = vmul.f32 %v755_v55, %v1295_v41 }
 0x221   :  { %v759_v12 = vmul.f32 0.5, %v758_v61 }
 0x222   :  { %812 = vst [vmem:[#allocation8 + $0xb0] sm:$0xff] %v788_v33 }
 0x223   :  { %v760_v62 = vsub.f32 1.5, %v759_v12 }
 0x225   :  { %v761_v44 = vmul.f32 %v993_v51, %v760_v62 }
 0x227   :  { %v765_v37 = vsel %vm764_vm15, %v993_v51, %v761_v44 }
 0x228   :  { %v789_v63 = vmul.f32 %v765_v37, %v1300_v46 }
 0x22a   :  { %813 = vst [vmem:[#allocation8 + $0xb8] sm:$0xff] %v789_v63 }
 0x22b   :  { %826 = dma.vmem_to_hbm [thread:$0]  %s819_s10, 3072, %s821_s13, [#allocation4], %s1097_s26, %s1097_s26, %s1098_s27  }
 0x22c   :  { %1094 = dma.done.wait [#allocation4], 3072  }
 0x22d   :  { %1095 = vsyncadd [#allocation4], 4294964224 }
 0x22e   :  { %831 = vsyncpa [#allocation3], 1 }
 0x22f   :  { %832 = vsyncpa [#allocation6], 1 }
 0x230   :  { %833 = vsyncpa [#allocation4], 1 }

</bundles_post_ra>
